<compile_context>
chip_gen: v6e
topology: v6e:2x2x1
jax: 0.10.0
libtpu: 0.0.40
codegen_flags: <defaults>
</compile_context>

<pallas_src>
import jax
import jax.numpy as jnp
from jax.experimental import pallas as pl
from jax.experimental.pallas import tpu as pltpu


def _one_body_matmul_kernel(c_ref, w_ref, o_ref):
    # c_ref: (TR, G*K)  packed codes (G batch rows per packed row, (L,S) flattened)
    # w_ref: (G*K, G)   block-diagonal, each block = log(pi) tiled L times
    # o_ref: (TR, G)    per-code one-body energies (lane-dense output)
    o_ref[...] = jnp.dot(
        c_ref[...].astype(jnp.float32),
        w_ref[...],
        preferred_element_type=jnp.float32,
    )


def one_body_mrf_potential(c_bls, n_types, type_rank, pi, pi_cdf, *, tb=4096):
    """Pallas implementation of the one-body MRF potential.

    c_bls : (B, L, S) float  -- code (soft or one-hot over n_symbols); bf16 ok.
    pi    : (S,)      float  -- source prior PMF over symbols
    n_types, type_rank, pi_cdf : accepted for interface parity (unused).
    returns: (B,) float32 one-body energies.
    """
    # TODO(synk): n_types, type_rank and pi_cdf are unused because the reference
    # forward() is abstract (NotImplementedError); only the canonical log-prior
    # one-body term is computed here.
    del n_types, type_rank, pi_cdf

    B, L, S = c_bls.shape
    K = L * S

    # Clamp pi so log(0) stays finite (avoids 0 * -inf = NaN for zero-prob symbols).
    log_pi = jnp.log(
        jnp.maximum(pi.astype(jnp.float32), jnp.finfo(jnp.float32).tiny)
    )

    # Pack G batch rows per streamed row so the lane dimension is >= 128.
    G = max(1, pl.cdiv(128, K))

    # Block-diagonal weight: W[g*K + l*S + s, g] = log_pi[s].
    w_row = jnp.tile(log_pi, L)  # (K,)
    W = (
        jnp.eye(G, dtype=jnp.float32)[:, None, :] * w_row[None, :, None]
    ).reshape(G * K, G)

    # Row tiling over packed rows; tail handled by zero-padding (not an assert).
    R = pl.cdiv(B, G)
    itemsize = jnp.dtype(c_bls.dtype).itemsize
    bytes_per_row = G * K * itemsize
    # Keep one input buffer <= ~16 MiB so the double-buffered pipeline fits
    # comfortably under v7x's 64 MiB VMEM (and under the explicit limit below).
    max_tr = max(8, (16 * 1024 * 1024) // bytes_per_row)
    tr = min(tb, max_tr)
    if tr >= R:
        tr = R  # single block spans the whole (padded) row axis
    else:
        tr = max(8, (tr // 8) * 8)  # sublane dim must be a multiple of 8
    grid = pl.cdiv(R, tr)
    R_pad = grid * tr
    B_pad = R_pad * G

    c2d = c_bls.reshape(B, K)
    if B_pad != B:
        c2d = jnp.pad(c2d, ((0, B_pad - B), (0, 0)))
    c_packed = c2d.reshape(R_pad, G * K)  # contiguous, free reshape

    out = pl.pallas_call(
        _one_body_matmul_kernel,
        out_shape=jax.ShapeDtypeStruct((R_pad, G), jnp.float32),
        grid_spec=pl.GridSpec(
            grid=(grid,),
            in_specs=[
                pl.BlockSpec((tr, G * K), lambda i: (i, 0)),
                pl.BlockSpec((G * K, G), lambda i: (0, 0)),
            ],
            out_specs=pl.BlockSpec((tr, G), lambda i: (i, 0)),
        ),
        compiler_params=pltpu.CompilerParams(
            dimension_semantics=("parallel",),
            vmem_limit_bytes=48 * 1024 * 1024,
        ),
    )(c_packed, W)

    return out.reshape(B_pad)[:B]


if __name__ == "__main__":
    key = jax.random.PRNGKey(0)

    # Small shapes consistent with the module's forward signature.
    batch_size = 16     # B
    code_length = 8     # L
    n_symbols = 4       # S
    n_types = jnp.int32(4)
    type_rank = jnp.int32(2)

    k_code, k_pi = jax.random.split(key)

    # Deterministic one-hot code c_bls: (B, L, S).
    sym_idx = jax.random.randint(k_code, (batch_size, code_length), 0, n_symbols)
    c_bls = jax.nn.one_hot(sym_idx, n_symbols, dtype=jnp.float32)

    # Deterministic source prior PMF over symbols and its CDF.
    logits = jax.random.normal(k_pi, (n_symbols,), dtype=jnp.float32)
    pi = jax.nn.softmax(logits)
    pi_cdf = jnp.cumsum(pi)

    energy = one_body_mrf_potential(c_bls, n_types, type_rank, pi, pi_cdf)
    energy = jax.block_until_ready(energy)

    # Pure-JAX reference (same clamped-log formulation).
    log_pi_ref = jnp.log(jnp.maximum(pi, jnp.finfo(jnp.float32).tiny))
    ref = jnp.einsum("bls,s->b", c_bls, log_pi_ref)
    assert energy.shape == (batch_size,)
    assert jnp.allclose(energy, ref, atol=1e-4, rtol=1e-5), (energy, ref)

    print("KERNEL_OK")
</pallas_src>

<mosaic_0001>
module attributes {stable_mosaic.version = 11 : i64} {
  func.func @_one_body_matmul_kernel(%arg0: i32, %arg1: memref<4x128xf32, #tpu.memory_space<vmem>>, %arg2: memref<128x4xf32, #tpu.memory_space<vmem>>, %arg3: memref<4x4xf32, #tpu.memory_space<vmem>>) attributes {dimension_semantics = [#tpu.dimension_semantics<parallel>], iteration_bounds = array<i64: 1>, scalar_prefetch = 0 : i64, scratch_operands = 0 : i64, tpu.core_type = #tpu.core_type<tc>, window_params = [{transform_indices = @transform_0, window_bounds = array<i64: 4, 128>}, {pipeline_mode = #tpu.pipeline_mode<synchronous>, transform_indices = @transform_1, window_bounds = array<i64: 128, 4>}, {transform_indices = @transform_2, window_bounds = array<i64: 4, 4>}]} {
    %c0 = arith.constant 0 : index
    %c0_0 = arith.constant 0 : index
    %0 = vector.load %arg1[%c0, %c0_0] : memref<4x128xf32, #tpu.memory_space<vmem>>, vector<4x128xf32>
    %c0_1 = arith.constant 0 : index
    %c0_2 = arith.constant 0 : index
    %1 = vector.load %arg2[%c0_1, %c0_2] : memref<128x4xf32, #tpu.memory_space<vmem>>, vector<128x4xf32>
    %cst = arith.constant dense<0.000000e+00> : vector<4x4xf32>
    %2 = tpu.matmul %0, %1, %cst {dimension_numbers = #tpu.dot_dimension_numbers<[1], [0], [0], [1], [0, 0, 1, 1], [], []>} : vector<4x128xf32>, vector<128x4xf32>, vector<4x4xf32> -> vector<4x4xf32>
    %c0_3 = arith.constant 0 : index
    %c0_4 = arith.constant 0 : index
    %3 = vector.load %arg3[%c0_3, %c0_4] : memref<4x4xf32, #tpu.memory_space<vmem>>, vector<4x4xf32>
    tpu.vector_store %arg3[%c0_3, %c0_4], %2 {strides = array<i32>} : memref<4x4xf32, #tpu.memory_space<vmem>>, vector<4x4xf32>,
    return
  }
  func.func @transform_0(%arg0: i32) -> (i32, i32) {
    %c0_i32 = arith.constant 0 : i32
    %c0_i32_0 = arith.constant 0 : i32
    return %arg0, %c0_i32 : i32, i32
  }
  func.func @transform_1(%arg0: i32) -> (i32, i32) {
    %c0_i32 = arith.constant 0 : i32
    %c0_i32_0 = arith.constant 0 : i32
    %c0_i32_1 = arith.constant 0 : i32
    return %c0_i32, %c0_i32_0 : i32, i32
  }
  func.func @transform_2(%arg0: i32) -> (i32, i32) {
    %c0_i32 = arith.constant 0 : i32
    %c0_i32_0 = arith.constant 0 : i32
    return %arg0, %c0_i32 : i32, i32
  }
}

</mosaic_0001>

<bundles_post_ra>
// kernel: tpu_custom_call.1
= control target key start
LH: loop header
LB: loop body
LE: loop exit
PB: predicated region body
PF: predicated region fallthrough
CT: control target
= control target key end

     0   :  { %v192_v1 = vmov 0.0   ;;  %vm193_vm0 = vmmov 0   ;;  %s264_s0 = inlined_call_operand.vmem [shape: f32[4,128], index: 0, kind: input, shape index: {}]   ;;  %s265_s1 = inlined_call_operand.vmem [shape: f32[128,4], index: 1, kind: input, shape index: {}]   ;;  %s266_s2 = inlined_call_operand.hbm [shape: f32[4,4], index: 2, kind: output, shape index: {}]  }
   0x1   :  { %v28_v0 = vld [vmem:[%s265_s1 + $0x78] sm:$0xff]  ;;  %132 = vmatprep.subr.mxu0 %v192_v1  ;;  %v27_v2 = vld [vmem:[%s265_s1 + $0x70] sm:$0xff]  ;;  %164 = vmatprep.mubr.msk.f32.mxu0 %vm193_vm0, %v192_v1  ;;  %v26_v3 = vld [vmem:[%s265_s1 + $0x68] sm:$0xff] }
   0x2   :  { %133 = vmatpush3.msra.mxu0 %v28_v0  ;;  %v25_v4 = vld [vmem:[%s265_s1 + $0x60] sm:$0xff] }
   0x3   :  { %134 = vmatprep.subr.mxu0 %v192_v1 }
   0x4   :  { %135 = vmatpush3.msra.mxu0 %v27_v2 }
   0x5   :  { %136 = vmatprep.subr.mxu0 %v192_v1 }
   0x6   :  { %7 = vsyncpa [#allocation3], 0  ;;  %137 = vmatpush3.msra.mxu0 %v26_v3  ;;  %v24_v5 = vld [vmem:[%s265_s1 + $0x58] sm:$0xff]  ;;  %v23_v6 = vld [vmem:[%s265_s1 + $0x50] sm:$0xff]  ;;  %s194_s15 = smov [#allocation2]   ;;  %vm99_vm1 = vcmask 27648  }
   0x7   :  { %138 = vmatprep.subr.mxu0 %v192_v1  ;;  %v22_v7 = vld [vmem:[%s265_s1 + $0x48] sm:$0xff]  ;;  %v21_v8 = vld [vmem:[%s265_s1 + $0x40] sm:$0xff]  ;;  %v20_v9 = vld [vmem:[%s265_s1 + $0x38] sm:$0xff]  ;;  %s107_s16 = sshll.u32 %s194_s15, 4  ;;  %s108_s16 = int_to_ptr.vmem [resolvable:$true] %s107_s16 }
   0x8   :  { %139 = vmatpush3.msra.mxu0 %v25_v4  ;;  %v19_v10 = vld [vmem:[%s265_s1 + $0x30] sm:$0xff]  ;;  %v18_v11 = vld [vmem:[%s265_s1 + $0x28] sm:$0xff]  ;;  %v17_v12 = vld [vmem:[%s265_s1 + $0x20] sm:$0xff]  ;;  %s170_s17 = scalar_lea.vmem %s108_s16, 64  ;;  %p175_p1 = scmp.lt.s32.totalorder %s108_s16, %s108_s16 }
   0x9   :  { %140 = vmatprep.subr.mxu0 %v192_v1  ;;  %v16_v13 = vld [vmem:[%s265_s1 + $0x18] sm:$0xff]  ;;  %v15_v14 = vld [vmem:[%s265_s1 + $0x10] sm:$0xff]  ;;  %v14_v15 = vld [vmem:[%s265_s1 + $0x8] sm:$0xff]  ;;  %p171_p0 = scmp.ne.s32.totalorder %s108_s16, %s170_s17  ;;  %p176_p2 = scmp.lt.s32.totalorder %s170_s17, %s170_s17 }
   0xa   :  { %141 = vmatpush3.msra.mxu0 %v24_v5  ;;  %v13_v16 = vld [vmem:[%s265_s1] sm:$0xff] }
   0xb   :  { %142 = vmatprep.subr.mxu0 %v192_v1  ;;  %v12_v17 = vld [vmem:[%s264_s0] sm:$0xf]  ;;  %p177_p3 = por %p176_p2, %p175_p1 }
   0xc   :  { %143 = vmatpush3.msra.mxu0 %v23_v6 }
   0xd   :  { %144 = vmatprep.subr.mxu0 %v192_v1  ;;  %p178_p4 = pnand %p177_p3, %p171_p0 }
   0xe   :  { %145 = vmatpush3.msra.mxu0 %v22_v7 }
   0xf   :  { %146 = vmatprep.subr.mxu0 %v192_v1 }
  0x10   :  { %147 = vmatpush3.msra.mxu0 %v21_v8 }
  0x11   :  { %148 = vmatprep.subr.mxu0 %v192_v1 }
  0x12   :  { %149 = vmatpush3.msra.mxu0 %v20_v9 }
  0x13   :  { %150 = vmatprep.subr.mxu0 %v192_v1 }
  0x14   :  { %151 = vmatpush3.msra.mxu0 %v19_v10 }
  0x15   :  { %152 = vmatprep.subr.mxu0 %v192_v1 }
  0x16   :  { %153 = vmatpush3.msra.mxu0 %v18_v11 }
  0x17   :  { %154 = vmatprep.subr.mxu0 %v192_v1 }
  0x18   :  { %155 = vmatpush3.msra.mxu0 %v17_v12 }
  0x19   :  { %156 = vmatprep.subr.mxu0 %v192_v1 }
  0x1a   :  { %157 = vmatpush3.msra.mxu0 %v16_v13 }
  0x1b   :  { %158 = vmatprep.subr.mxu0 %v192_v1 }
  0x1c   :  { %159 = vmatpush3.msra.mxu0 %v15_v14 }
  0x1d   :  { %160 = vmatprep.subr.mxu0 %v192_v1 }
  0x1e   :  { %161 = vmatpush3.msra.mxu0 %v14_v15 }
  0x1f   :  { %162 = vmatprep.subr.mxu0 %v192_v1 }
  0x20   :  { %163 = vmatpush3.msra.mxu0 %v13_v16 }
  0x21   :  { %165 = vmatmul.mubr.f32.vlgmr.msra.gmra.mxu0 %v12_v17 }
  0xe1   :  { %v95_v18 = vpop.f32.mrf.mxu0 }
  0xe2   :  { %100 = vst.msk [vmem:[#allocation2] sm:$0xf] %vm99_vm1, %v95_v18 }
  0xe3   :  { %v166_v19 = vpop.f32.mrf.mxu0 }
  0xe4   :  { %181 = shalt.err (!%p178_p4)
}
  0xe5   :  { %110 = dma.vmem_to_hbm [thread:$0]  %s108_s16, 64, %s266_s2, [#allocation3]  }
  0xe6   :  { %190 = dma.done.wait [#allocation3], 64  }
  0xe7   :  { %191 = vsyncadd [#allocation3], 4294967232 }
  0xe8   :  { %114 = vsyncpa [#allocation3], 1 }

</bundles_post_ra>
